<compile_context>
chip_gen: v7x
topology: tpu7x:2x2x1
jax: 0.10.0
libtpu: 0.0.40
codegen_flags: <defaults>
</compile_context>

<pallas_src>
import functools

import jax
import jax.numpy as jnp
from jax.experimental import pallas as pl
from jax.experimental.pallas import tpu as pltpu


def _round_up(x, m):
    return -(-x // m) * m


# --------------------------------------------------------------------------- #
# Chip-generation aware defaults
# --------------------------------------------------------------------------- #
def _device_kind():
    try:
        return jax.devices()[0].device_kind.lower()
    except Exception:
        return ""


def _is_multi_core():
    # Only v7x has 2 TensorCores per chip; keep grid >= 2 there so the
    # "parallel" batch axis can be sharded across both cores.
    kind = _device_kind()
    return ("v7" in kind) or ("7x" in kind)


def _choose_pack(num_inputs, hidden, num_outputs):
    """Row-packing factor (how many batch rows are folded onto the lane axis)."""
    if num_inputs > 128 or 128 % num_inputs != 0:
        # Perf cliff: falls back to the masked num_inputs/128-lane layout.
        return 1
    lane_fold = 128 // num_inputs          # rows needed to fill 128 lanes
    kind = _device_kind()
    if "v5" in kind:
        base = 8                            # K=128 already saturates the v5e MXU
    elif "v6" in kind:
        base = 16                           # K=256 fills the 256-deep MXU
    elif ("v7" in kind) or ("7x" in kind):
        base = 32                           # fully 128-lane-dense output stores
    else:
        base = 8                            # unknown backend: conservative choice
    pack = max(base, lane_fold)
    pack = (pack // lane_fold) * lane_fold  # keep in_w a multiple of 128
    # Keep the block-diagonal weights small enough to stay VMEM-resident.
    while pack > lane_fold and pack * max(num_inputs, hidden, num_outputs) > 4096:
        pack //= 2
    return max(pack, 1)


def _choose_act_dtype(compute_dtype):
    """Precision for bias-add + tanh.  f32 on v5e (no bf16 VPU/EUP) and in the
    exact f32 path; bf16 on v6e/v7x (doubles EUP throughput)."""
    if jnp.dtype(compute_dtype) == jnp.dtype(jnp.float32):
        return jnp.float32
    kind = _device_kind()
    if "v5" in kind or kind == "":
        return jnp.float32
    return jnp.bfloat16


# --------------------------------------------------------------------------- #
# Parameter packing (call ONCE, outside the hot path)
# --------------------------------------------------------------------------- #
def pack_params(w1, b1, w2, b2, *, pack, param_dtype=jnp.bfloat16):
    """Build block-diagonal (I_pack (x) W) weights and lane-tiled biases."""
    hidden = w1.shape[1]
    num_outputs = w2.shape[1]
    eye = jnp.eye(pack, dtype=jnp.float32)
    w1k = jnp.kron(eye, w1.astype(jnp.float32)).astype(param_dtype)          # (in_w, hid_w)
    w2k = jnp.kron(eye, w2.astype(jnp.float32)).astype(param_dtype)          # (hid_w, out_w)
    b1k = jnp.tile(b1.reshape(1, hidden).astype(jnp.float32), (1, pack))     # (1, hid_w)
    b2k = jnp.tile(b2.reshape(1, num_outputs).astype(jnp.float32), (1, pack))  # (1, out_w)
    return w1k, b1k, w2k, b2k


# --------------------------------------------------------------------------- #
# Kernel
# --------------------------------------------------------------------------- #
def _mlp_kernel(x_ref, w1_ref, b1_ref, w2_ref, b2_ref, o_ref, *, act_dtype):
    """out = tanh(x @ W1 + b1) @ W2 + b2 for one packed batch tile.

    Operands arrive row-packed: `pack` consecutive batch rows live on the lane
    axis and the weights are block-diagonal (I_pack (x) W), so every load/store
    and both MXU matmuls are lane-dense; no in-kernel reshape/transpose.
    x arrives in its native dtype (f32) and is cast to the weight dtype here
    (free VPU work), so the wrapper never materializes a casted copy in HBM.
    """
    x = x_ref[...].astype(w1_ref.dtype)                   # (bm, pack*num_inputs)
    acc1 = jnp.dot(x, w1_ref[...], preferred_element_type=jnp.float32)
    acc1 = acc1 + b1_ref[...]                              # f32 accumulate + bias
    if jnp.dtype(act_dtype) == jnp.dtype(jnp.float32):
        h = jnp.tanh(acc1)                                 # f32 EUP (v5e / exact path)
    else:
        h = jnp.tanh(acc1.astype(act_dtype))               # bf16 EUP (v6e / v7x)
    y = jnp.dot(h.astype(w2_ref.dtype), w2_ref[...],
                preferred_element_type=jnp.float32) + b2_ref[...]
    o_ref[...] = y.astype(o_ref.dtype)


# --------------------------------------------------------------------------- #
# Pallas forward on pre-packed parameters (the hot path)
# --------------------------------------------------------------------------- #
@functools.partial(jax.jit, static_argnames=("pack", "block_rows", "act_dtype",
                                             "out_dtype", "multi_core"))
def mlp_forward_packed(x, w1k, b1k, w2k, b2k, *, pack, block_rows=8192,
                       act_dtype=jnp.bfloat16, out_dtype=jnp.float32,
                       multi_core=False):
    """y = tanh(x @ W1 + b1) @ W2 + b2 using pre-packed block-diagonal params."""
    B, num_inputs = x.shape
    in_w, hid_w = w1k.shape
    out_w = w2k.shape[1]
    assert in_w == pack * num_inputs
    num_outputs = out_w // pack

    # ---- batch tiling (sublane granularity is dtype-aware). ----
    itemsize = min(jnp.dtype(x.dtype).itemsize, jnp.dtype(out_dtype).itemsize)
    sub = 16 if itemsize < 4 else 8
    unit = pack * sub
    block_rows = max(unit, (block_rows // unit) * unit)
    block_rows = min(block_rows, _round_up(B, unit))
    if multi_core and B >= 2 * unit:
        # v7x only: keep at least 2 tiles so the parallel axis spans both TCs.
        block_rows = min(block_rows, (B // (2 * unit)) * unit)
    B_pad = _round_up(B, block_rows)
    grid = (B_pad // block_rows,)
    bm = block_rows // pack                     # packed rows per tile

    # ---- lane-dense packed input view; pad ONLY the ragged tail. ----
    x_in = x
    if B_pad != B:
        x_in = jnp.pad(x, ((0, B_pad - B), (0, 0)))
    x_p = x_in.reshape(B_pad // pack, in_w)     # free row-major reshape

    kernel = functools.partial(_mlp_kernel, act_dtype=act_dtype)
    out_p = pl.pallas_call(
        kernel,
        out_shape=jax.ShapeDtypeStruct((B_pad // pack, out_w), out_dtype),
        grid_spec=pltpu.PrefetchScalarGridSpec(
            num_scalar_prefetch=0,
            grid=grid,
            in_specs=[
                # Streaming input (native dtype, cast inside the kernel).
                pl.BlockSpec((bm, in_w), lambda i: (i, 0)),
                # Parameters: constant block index -> fetched once, stay resident.
                pl.BlockSpec((in_w, hid_w), lambda i: (0, 0)),
                pl.BlockSpec((1, hid_w), lambda i: (0, 0)),
                pl.BlockSpec((hid_w, out_w), lambda i: (0, 0)),
                pl.BlockSpec((1, out_w), lambda i: (0, 0)),
            ],
            out_specs=pl.BlockSpec((bm, out_w), lambda i: (i, 0)),
        ),
        compiler_params=pltpu.CompilerParams(
            dimension_semantics=("parallel",),
            vmem_limit_bytes=32 * 1024 * 1024,
        ),
    )(x_p, w1k, b1k, w2k, b2k)

    # Free reshape back to the module's (B, num_outputs) layout; drop padding.
    return out_p.reshape(B_pad, num_outputs)[:B]


# --------------------------------------------------------------------------- #
# Convenience wrapper taking raw (unpacked) parameters
# --------------------------------------------------------------------------- #
def neural_network_forward(x, w1, b1, w2, b2, *, block_rows=8192, pack=None,
                           compute_dtype=jnp.bfloat16, out_dtype=None):
    """y = tanh(x @ W1 + b1) @ W2 + b2.

    x:(B,num_inputs)  w1:(num_inputs,H)  b1:(1,H)  w2:(H,num_outputs)  b2:(1,num_outputs)

    For repeated calls, prefer pack_params(...) once + mlp_forward_packed(...)
    so the (tiny) kron/tile packing is off the per-call critical path.
    """
    num_inputs = x.shape[1]
    hidden = w1.shape[1]
    num_outputs = w2.shape[1]
    if pack is None:
        pack = _choose_pack(num_inputs, hidden, num_outputs)
    if out_dtype is None:
        out_dtype = x.dtype
    act_dtype = _choose_act_dtype(compute_dtype)
    packed = pack_params(w1, b1, w2, b2, pack=pack, param_dtype=compute_dtype)
    return mlp_forward_packed(x, *packed, pack=pack, block_rows=block_rows,
                              act_dtype=act_dtype, out_dtype=out_dtype,
                              multi_core=_is_multi_core())


def init_params(key, num_inputs, num_outputs, hidden_size=32, dtype=jnp.float32):
    """Mirror torch.nn.Linear default init: U(-1/sqrt(fan_in), 1/sqrt(fan_in))."""
    k1, k2, k3, k4 = jax.random.split(key, 4)
    bound1 = 1.0 / jnp.sqrt(num_inputs)
    bound2 = 1.0 / jnp.sqrt(hidden_size)
    # Stored transposed to (in, out) for row-major matmuls.
    w1 = jax.random.uniform(k1, (num_inputs, hidden_size), dtype, -bound1, bound1)
    b1 = jax.random.uniform(k2, (1, hidden_size), dtype, -bound1, bound1)
    w2 = jax.random.uniform(k3, (hidden_size, num_outputs), dtype, -bound2, bound2)
    b2 = jax.random.uniform(k4, (1, num_outputs), dtype, -bound2, bound2)
    return w1, b1, w2, b2


if __name__ == "__main__":
    # Small shapes consistent with the module: num_inputs=16, hidden=32, num_outputs=4.
    batch, num_inputs, hidden_size, num_outputs = 512, 16, 32, 4

    key = jax.random.PRNGKey(0)
    kx, kp = jax.random.split(key)
    x = jax.random.normal(kx, (batch, num_inputs), dtype=jnp.float32)
    w1, b1, w2, b2 = init_params(kp, num_inputs, num_outputs, hidden_size)

    # Pure-JAX reference (same math as the PyTorch module).
    ref = jnp.tanh(x @ w1 + b1) @ w2 + b2

    pack = _choose_pack(num_inputs, hidden_size, num_outputs)
    multi_core = _is_multi_core()

    # ---- Exact-precision path (f32 params & activations): tight check that the
    #      packed / block-diagonal formulation matches the module numerically. ----
    p32 = pack_params(w1, b1, w2, b2, pack=pack, param_dtype=jnp.float32)
    out_f32 = mlp_forward_packed(x, *p32, pack=pack, block_rows=8192,
                                 act_dtype=jnp.float32, out_dtype=jnp.float32,
                                 multi_core=multi_core)
    out_f32 = jax.block_until_ready(out_f32)
    assert out_f32.shape == (batch, num_outputs)
    assert jnp.allclose(out_f32, ref, atol=1e-4, rtol=1e-4)

    # ---- Performance path: bf16 weights packed once (hoisted off the per-call
    #      path), x streamed in native f32 and cast in-kernel, f32 accumulation,
    #      generation-specific tanh precision. ----
    pbf = pack_params(w1, b1, w2, b2, pack=pack, param_dtype=jnp.bfloat16)
    act_dtype = _choose_act_dtype(jnp.bfloat16)
    out_bf = mlp_forward_packed(x, *pbf, pack=pack, block_rows=8192,
                                act_dtype=act_dtype, out_dtype=jnp.float32,
                                multi_core=multi_core)
    out_bf = jax.block_until_ready(out_bf)
    assert out_bf.shape == (batch, num_outputs)
    assert jnp.allclose(out_bf, ref, atol=5e-2, rtol=5e-2)

    # Convenience wrapper path (packs internally, single call).
    out_conv = jax.block_until_ready(neural_network_forward(x, w1, b1, w2, b2))
    assert out_conv.shape == (batch, num_outputs)
    assert jnp.allclose(out_conv, ref, atol=5e-2, rtol=5e-2)

    print("KERNEL_OK")
</pallas_src>

<mosaic_0001>
module attributes {stable_mosaic.version = 11 : i64} {
  func.func @_mlp_kernel(%arg0: i32, %arg1: memref<64x128xf32, #tpu.memory_space<vmem>>, %arg2: memref<128x256xf32, #tpu.memory_space<vmem>>, %arg3: memref<1x256xf32, #tpu.memory_space<vmem>>, %arg4: memref<256x32xf32, #tpu.memory_space<vmem>>, %arg5: memref<1x32xf32, #tpu.memory_space<vmem>>, %arg6: memref<64x32xf32, #tpu.memory_space<vmem>>) attributes {dimension_semantics = [#tpu.dimension_semantics<parallel>], iteration_bounds = array<i64: 1>, scalar_prefetch = 0 : i64, scratch_operands = 0 : i64, tpu.core_type = #tpu.core_type<tc>, window_params = [{transform_indices = @transform_0, window_bounds = array<i64: 64, 128>}, {pipeline_mode = #tpu.pipeline_mode<synchronous>, transform_indices = @transform_1, window_bounds = array<i64: 128, 256>}, {pipeline_mode = #tpu.pipeline_mode<synchronous>, transform_indices = @transform_2, window_bounds = array<i64: 1, 256>}, {pipeline_mode = #tpu.pipeline_mode<synchronous>, transform_indices = @transform_3, window_bounds = array<i64: 256, 32>}, {pipeline_mode = #tpu.pipeline_mode<synchronous>, transform_indices = @transform_4, window_bounds = array<i64: 1, 32>}, {transform_indices = @transform_5, window_bounds = array<i64: 64, 32>}]} {
    %c0 = arith.constant 0 : index
    %c0_0 = arith.constant 0 : index
    %0 = vector.load %arg1[%c0, %c0_0] : memref<64x128xf32, #tpu.memory_space<vmem>>, vector<64x128xf32>
    %c0_1 = arith.constant 0 : index
    %c0_2 = arith.constant 0 : index
    %1 = vector.load %arg2[%c0_1, %c0_2] : memref<128x256xf32, #tpu.memory_space<vmem>>, vector<128x256xf32>
    %cst = arith.constant dense<0.000000e+00> : vector<64x256xf32>
    %2 = tpu.matmul %0, %1, %cst {dimension_numbers = #tpu.dot_dimension_numbers<[1], [0], [0], [1], [0, 0, 1, 1], [], []>} : vector<64x128xf32>, vector<128x256xf32>, vector<64x256xf32> -> vector<64x256xf32>
    %c0_3 = arith.constant 0 : index
    %c0_4 = arith.constant 0 : index
    %3 = vector.load %arg3[%c0_3, %c0_4] : memref<1x256xf32, #tpu.memory_space<vmem>>, vector<1x256xf32>
    %4 = vector.broadcast %3 : vector<1x256xf32> to vector<64x256xf32>
    %5 = arith.addf %2, %4 : vector<64x256xf32>
    %6 = math.tanh %5 : vector<64x256xf32>
    %c0_5 = arith.constant 0 : index
    %c0_6 = arith.constant 0 : index
    %7 = vector.load %arg4[%c0_5, %c0_6] : memref<256x32xf32, #tpu.memory_space<vmem>>, vector<256x32xf32>
    %cst_7 = arith.constant dense<0.000000e+00> : vector<64x32xf32>
    %8 = tpu.matmul %6, %7, %cst_7 {dimension_numbers = #tpu.dot_dimension_numbers<[1], [0], [0], [1], [0, 0, 1, 1], [], []>} : vector<64x256xf32>, vector<256x32xf32>, vector<64x32xf32> -> vector<64x32xf32>
    %c0_8 = arith.constant 0 : index
    %c0_9 = arith.constant 0 : index
    %9 = vector.load %arg5[%c0_8, %c0_9] : memref<1x32xf32, #tpu.memory_space<vmem>>, vector<1x32xf32>
    %10 = vector.broadcast %9 : vector<1x32xf32> to vector<64x32xf32>
    %11 = arith.addf %8, %10 : vector<64x32xf32>
    %c0_10 = arith.constant 0 : index
    %c0_11 = arith.constant 0 : index
    %12 = vector.load %arg6[%c0_10, %c0_11] : memref<64x32xf32, #tpu.memory_space<vmem>>, vector<64x32xf32>
    tpu.vector_store %arg6[%c0_10, %c0_11], %11 {strides = array<i32>} : memref<64x32xf32, #tpu.memory_space<vmem>>, vector<64x32xf32>,
    return
  }
  func.func @transform_0(%arg0: i32) -> (i32, i32) {
    %c0_i32 = arith.constant 0 : i32
    %c0_i32_0 = arith.constant 0 : i32
    return %arg0, %c0_i32 : i32, i32
  }
  func.func @transform_1(%arg0: i32) -> (i32, i32) {
    %c0_i32 = arith.constant 0 : i32
    %c0_i32_0 = arith.constant 0 : i32
    %c0_i32_1 = arith.constant 0 : i32
    return %c0_i32, %c0_i32_0 : i32, i32
  }
  func.func @transform_2(%arg0: i32) -> (i32, i32) {
    %c0_i32 = arith.constant 0 : i32
    %c0_i32_0 = arith.constant 0 : i32
    %c0_i32_1 = arith.constant 0 : i32
    return %c0_i32, %c0_i32_0 : i32, i32
  }
  func.func @transform_3(%arg0: i32) -> (i32, i32) {
    %c0_i32 = arith.constant 0 : i32
    %c0_i32_0 = arith.constant 0 : i32
    %c0_i32_1 = arith.constant 0 : i32
    return %c0_i32, %c0_i32_0 : i32, i32
  }
  func.func @transform_4(%arg0: i32) -> (i32, i32) {
    %c0_i32 = arith.constant 0 : i32
    %c0_i32_0 = arith.constant 0 : i32
    %c0_i32_1 = arith.constant 0 : i32
    return %c0_i32, %c0_i32_0 : i32, i32
  }
  func.func @transform_5(%arg0: i32) -> (i32, i32) {
    %c0_i32 = arith.constant 0 : i32
    %c0_i32_0 = arith.constant 0 : i32
    return %arg0, %c0_i32 : i32, i32
  }
}

</mosaic_0001>

<bundles_post_ra>
// kernel: mlp_forward_packed.1
= control target key start
LH: loop header
LB: loop body
LE: loop exit
PB: predicated region body
PF: predicated region fallthrough
CT: control target
= control target key end

     0   :  { %v512_v3 = vmov 0.0   ;;  %vm345_vm0 = vcmask 261120   ;;  %s815_s1 = inlined_call_operand.vmem [shape: f32[128,256], index: 1, kind: input, shape index: {}]   ;;  %s816_s3 = inlined_call_operand.vmem [shape: f32[256,32], index: 3, kind: input, shape index: {}]   ;;  %s817_s0 = inlined_call_operand.vmem [shape: f32[64,128], index: 0, kind: input, shape index: {}]   ;;  %s818_s2 = inlined_call_operand.vmem [shape: f32[1,256], index: 2, kind: input, shape index: {}]   ;;  %s819_s4 = inlined_call_operand.vmem [shape: f32[1,32], index: 4, kind: input, shape index: {}]   ;;  %s820_s5 = inlined_call_operand.vmem [shape: f32[64,32], index: 5, kind: output, shape index: {}]  }
   0x1   :  { %v29_v0 = vld [vmem:[%s815_s1 + $0x8] sm:$0xff]  ;;  %v31_v1 = vld [vmem:[%s815_s1 + $0x18] sm:$0xff]  ;;  %v28_v2 = vld [vmem:[%s815_s1] sm:$0xff]  ;;  %136 = vmatprep.mubr.f32.mxu0 %v512_v3 }
   0x2   :  { %v415_v4 = vpack.c.bf16 %v31_v1, %v29_v0  ;;  %v30_v5 = vld [vmem:[%s815_s1 + $0x10] sm:$0xff]  ;;  %v33_v6 = vld [vmem:[%s815_s1 + $0x28] sm:$0xff]  ;;  %v35_v7 = vld [vmem:[%s815_s1 + $0x38] sm:$0xff] }
   0x3   :  { %v417_v8 = vpack.c.bf16 %v30_v5, %v28_v2  ;;  %v419_v9 = vpack.c.bf16 %v35_v7, %v33_v6  ;;  %v32_v10 = vld [vmem:[%s815_s1 + $0x20] sm:$0xff]  ;;  %v34_v11 = vld [vmem:[%s815_s1 + $0x30] sm:$0xff]  ;;  %v37_v12 = vld [vmem:[%s815_s1 + $0x48] sm:$0xff] }
   0x4   :  { %416 = vmatprep.subr.bf16.mxu0 %v415_v4  ;;  %v39_v13 = vld [vmem:[%s815_s1 + $0x58] sm:$0xff]  ;;  %v421_v14 = vpack.c.bf16 %v34_v11, %v32_v10  ;;  %v36_v16 = vld [vmem:[%s815_s1 + $0x40] sm:$0xff]  ;;  %v38_v17 = vld [vmem:[%s815_s1 + $0x50] sm:$0xff] }
   0x5   :  { %418 = vmatpush1.bf16.msra.mxu0 %v417_v8  ;;  %v423_v15 = vpack.c.bf16 %v39_v13, %v37_v12  ;;  %v41_v18 = vld [vmem:[%s815_s1 + $0x68] sm:$0xff]  ;;  %v43_v19 = vld [vmem:[%s815_s1 + $0x78] sm:$0xff]  ;;  %v425_v20 = vpack.c.bf16 %v38_v17, %v36_v16  ;;  %v40_v22 = vld [vmem:[%s815_s1 + $0x60] sm:$0xff] }
   0x6   :  { %420 = vmatprep.subr.bf16.mxu0 %v419_v9  ;;  %v427_v21 = vpack.c.bf16 %v43_v19, %v41_v18  ;;  %v42_v23 = vld [vmem:[%s815_s1 + $0x70] sm:$0xff]  ;;  %v45_v24 = vld [vmem:[%s815_s1 + $0x88] sm:$0xff]  ;;  %v47_v25 = vld [vmem:[%s815_s1 + $0x98] sm:$0xff] }
   0x7   :  { %v429_v26 = vpack.c.bf16 %v42_v23, %v40_v22  ;;  %v44_v27 = vld [vmem:[%s815_s1 + $0x80] sm:$0xff]  ;;  %v46_v28 = vld [vmem:[%s815_s1 + $0x90] sm:$0xff]  ;;  %v49_v29 = vld [vmem:[%s815_s1 + $0xa8] sm:$0xff]  ;;  %v431_v30 = vpack.c.bf16 %v47_v25, %v45_v24 }
   0x8   :  { %v51_v31 = vld [vmem:[%s815_s1 + $0xb8] sm:$0xff]  ;;  %v217_v32 = vld [vmem:[%s816_s3 + $0x80] sm:$0xff]  ;;  %v218_v33 = vld [vmem:[%s816_s3 + $0x88] sm:$0xff]  ;;  %v433_v42 = vpack.c.bf16 %v46_v28, %v44_v27 }
   0x9   :  { %422 = vmatpush1.bf16.msra.mxu0 %v421_v14  ;;  %v447_v34 = vpack.c.bf16 %v218_v33, %v217_v32  ;;  %v201_v35 = vld [vmem:[%s816_s3] sm:$0xff]  ;;  %v202_v36 = vld [vmem:[%s816_s3 + $0x8] sm:$0xff]  ;;  %v219_v37 = vld [vmem:[%s816_s3 + $0x90] sm:$0xff]  ;;  %v435_v46 = vpack.c.bf16 %v51_v31, %v49_v29 }
   0xa   :  { %424 = vmatprep.subr.bf16.mxu0 %v423_v15  ;;  %v449_v38 = vpack.c.bf16 %v202_v36, %v201_v35  ;;  %v220_v39 = vld [vmem:[%s816_s3 + $0x98] sm:$0xff]  ;;  %v203_v40 = vld [vmem:[%s816_s3 + $0x10] sm:$0xff]  ;;  %v221_v44 = vld [vmem:[%s816_s3 + $0xa0] sm:$0xff] }
   0xb   :  { %v204_v41 = vld [vmem:[%s816_s3 + $0x18] sm:$0xff]  ;;  %448 = vmatprep.subr.bf16.mxu1 %v447_v34  ;;  %v451_v43 = vpack.c.bf16 %v220_v39, %v219_v37  ;;  %v222_v45 = vld [vmem:[%s816_s3 + $0xa8] sm:$0xff]  ;;  %v48_v47 = vld [vmem:[%s815_s1 + $0xa0] sm:$0xff] }
   0xc   :  { %v50_v48 = vld [vmem:[%s815_s1 + $0xb0] sm:$0xff]  ;;  %v53_v49 = vld [vmem:[%s815_s1 + $0xc8] sm:$0xff]  ;;  %450 = vmatpush3.bf16.msra.mxu1 %v449_v38  ;;  %v453_v50 = vpack.c.bf16 %v204_v41, %v203_v40  ;;  %v55_v51 = vld [vmem:[%s815_s1 + $0xd8] sm:$0xff]  ;;  %v455_v52 = vpack.c.bf16 %v222_v45, %v221_v44  ;;  %v62_v41 = vlaneseq }
   0xd   :  { %426 = vmatpush1.bf16.msra.mxu0 %v425_v20  ;;  %452 = vmatprep.subr.bf16.mxu1 %v451_v43  ;;  %v205_v53 = vld [vmem:[%s816_s3 + $0x20] sm:$0xff]  ;;  %v206_v54 = vld [vmem:[%s816_s3 + $0x28] sm:$0xff]  ;;  %v223_v55 = vld [vmem:[%s816_s3 + $0xb0] sm:$0xff]  ;;  %v437_v57 = vpack.c.bf16 %v50_v48, %v48_v47  ;;  %v439_v58 = vpack.c.bf16 %v55_v51, %v53_v49 }
   0xe   :  { %428 = vmatprep.subr.bf16.mxu0 %v427_v21  ;;  %v224_v56 = vld [vmem:[%s816_s3 + $0xb8] sm:$0xff]  ;;  %v52_v59 = vld [vmem:[%s815_s1 + $0xc0] sm:$0xff]  ;;  %v54_v60 = vld [vmem:[%s815_s1 + $0xd0] sm:$0xff]  ;;  %v457_v62 = vpack.c.bf16 %v206_v54, %v205_v53 }
   0xf   :  { %v57_v61 = vld [vmem:[%s815_s1 + $0xe8] sm:$0xff]  ;;  %v59_v63 = vld [vmem:[%s815_s1 + $0xf8] sm:$0xff]  ;;  %v459_v0 = vpack.c.bf16 %v224_v56, %v223_v55  ;;  %v207_v1 = vld [vmem:[%s816_s3 + $0x30] sm:$0xff]  ;;  %v441_v4 = vpack.c.bf16 %v54_v60, %v52_v59 }
  0x10   :  { %454 = vmatpush3.bf16.msra.mxu1 %v453_v50  ;;  %v208_v2 = vld [vmem:[%s816_s3 + $0x38] sm:$0xff]  ;;  %v443_v5 = vpack.c.bf16 %v59_v63, %v57_v61  ;;  %v56_v6 = vld [vmem:[%s815_s1 + $0xe0] sm:$0xff]  ;;  %v58_v7 = vld [vmem:[%s815_s1 + $0xf0] sm:$0xff] }
  0x11   :  { %430 = vmatpush1.bf16.msra.mxu0 %v429_v26  ;;  %456 = vmatprep.subr.bf16.mxu1 %v455_v52  ;;  %v461_v8 = vpack.c.bf16 %v208_v2, %v207_v1  ;;  %v445_v9 = vpack.c.bf16 %v58_v7, %v56_v6  ;;  %v20_v10 = vld [vmem:[%s817_s0] sm:$0xff]  ;;  %v21_v11 = vld [vmem:[%s817_s0 + $0x8] sm:$0xff]  ;;  %v22_v12 = vld [vmem:[%s817_s0 + $0x10] sm:$0xff] }
  0x12   :  { %432 = vmatprep.subr.bf16.mxu0 %v431_v30  ;;  %v23_v13 = vld [vmem:[%s817_s0 + $0x18] sm:$0xff]  ;;  %v24_v14 = vld [vmem:[%s817_s0 + $0x20] sm:$0xff]  ;;  %v25_v15 = vld [vmem:[%s817_s0 + $0x28] sm:$0xff] }
  0x13   :  { %v26_v16 = vld [vmem:[%s817_s0 + $0x30] sm:$0xff]  ;;  %v27_v17 = vld [vmem:[%s817_s0 + $0x38] sm:$0xff]  ;;  %v225_v18 = vld [vmem:[%s816_s3 + $0xc0] sm:$0xff] }
  0x14   :  { %458 = vmatpush3.bf16.msra.mxu1 %v457_v62  ;;  %v226_v19 = vld [vmem:[%s816_s3 + $0xc8] sm:$0xff]  ;;  %v209_v21 = vld [vmem:[%s816_s3 + $0x40] sm:$0xff]  ;;  %v227_v23 = vld [vmem:[%s816_s3 + $0xd0] sm:$0xff] }
  0x15   :  { %434 = vmatpush1.bf16.msra.mxu0 %v433_v42  ;;  %460 = vmatprep.subr.bf16.mxu1 %v459_v0  ;;  %v463_v20 = vpack.c.bf16 %v226_v19, %v225_v18  ;;  %v228_v24 = vld [vmem:[%s816_s3 + $0xd8] sm:$0xff]  ;;  %v211_v26 = vld [vmem:[%s816_s3 + $0x50] sm:$0xff]  ;;  %v229_v29 = vld [vmem:[%s816_s3 + $0xe0] sm:$0xff]  ;;  %v63_v42 = vshrl.u32 %v62_v41, 7 }
  0x16   :  { %436 = vmatprep.subr.bf16.mxu0 %v435_v46  ;;  %v467_v25 = vpack.c.bf16 %v228_v24, %v227_v23  ;;  %v212_v27 = vld [vmem:[%s816_s3 + $0x58] sm:$0xff]  ;;  %v230_v30 = vld [vmem:[%s816_s3 + $0xe8] sm:$0xff]  ;;  %v213_v32 = vld [vmem:[%s816_s3 + $0x60] sm:$0xff] }
  0x17   :  { %v469_v28 = vpack.c.bf16 %v212_v27, %v211_v26  ;;  %v471_v31 = vpack.c.bf16 %v230_v30, %v229_v29  ;;  %v214_v33 = vld [vmem:[%s816_s3 + $0x68] sm:$0xff]  ;;  %v231_v35 = vld [vmem:[%s816_s3 + $0xf0] sm:$0xff]  ;;  %v232_v36 = vld [vmem:[%s816_s3 + $0xf8] sm:$0xff]  ;;  %v64_v43 = vsub.s32 0, %v63_v42  ;;  %v68_v45 = vsub.s32 1, %v63_v42 }
  0x18   :  { %462 = vmatpush3.bf16.msra.mxu1 %v461_v8  ;;  %v473_v34 = vpack.c.bf16 %v214_v33, %v213_v32  ;;  %v475_v37 = vpack.c.bf16 %v232_v36, %v231_v35  ;;  %v215_v38 = vld [vmem:[%s816_s3 + $0x70] sm:$0xff]  ;;  %v216_v39 = vld [vmem:[%s816_s3 + $0x78] sm:$0xff]  ;;  %v60_v44 = vld [vmem:[%s818_s2] sm:$0x3] }
  0x19   :  { %438 = vmatpush1.bf16.msra.mxu0 %v437_v57  ;;  %464 = vmatprep.subr.bf16.mxu1 %v463_v20  ;;  %v477_v40 = vpack.c.bf16 %v216_v39, %v215_v38  ;;  %v65_v46 = vrot.slane %v60_v44, %v64_v43  ;;  %v770_v47 = vrot.slane %v60_v44, %v68_v45  ;;  %v358_v33 = vld [vmem:[%s819_s4] ss:$0 sm:$0xff] }
  0x1a   :  { %440 = vmatprep.subr.bf16.mxu0 %v439_v58 }
  0x1d   :  { %442 = vmatpush1.bf16.msra.mxu0 %v441_v4 }
  0x1e   :  { %444 = vmatprep.subr.bf16.mxu0 %v443_v5 }
  0x21   :  { %446 = vmatpush1.bf16.msra.mxu0 %v445_v9 }
  0x24   :  { %137 = vmatmul.mubr.f32.vlgmr.msra.gmra.mrb[0].mxu0 %v20_v10 }
  0x25   :  { %142 = vmatprep.mubr.f32.mxu0 %v512_v3 }
  0x28   :  { %143 = vmatmul.mubr.f32.gmra.mrb[2].mxu0 %v21_v11 }
  0x29   :  { %148 = vmatprep.mubr.f32.mxu0 %v512_v3 }
  0x2c   :  { %149 = vmatmul.mubr.f32.gmra.mrb[4].mxu0 %v22_v12 }
  0x2d   :  { %154 = vmatprep.mubr.f32.mxu0 %v512_v3 }
  0x30   :  { %155 = vmatmul.mubr.f32.gmra.mrb[6].mxu0 %v23_v13 }
  0x31   :  { %160 = vmatprep.mubr.f32.mxu0 %v512_v3 }
  0x34   :  { %161 = vmatmul.mubr.f32.gmra.mrb[8].mxu0 %v24_v14 }
  0x35   :  { %166 = vmatprep.mubr.f32.mxu0 %v512_v3 }
  0x38   :  { %167 = vmatmul.mubr.f32.gmra.mrb[10].mxu0 %v25_v15 }
  0x39   :  { %172 = vmatprep.mubr.f32.mxu0 %v512_v3 }
  0x3c   :  { %173 = vmatmul.mubr.f32.gmra.mrb[12].mxu0 %v26_v16 }
  0x3d   :  { %178 = vmatprep.mubr.f32.mxu0 %v512_v3  ;;  %v210_v3 = vld [vmem:[%s816_s3 + $0x48] sm:$0xff] }
  0x3e   :  { %v465_v22 = vpack.c.bf16 %v210_v3, %v209_v21 }
  0x40   :  { %179 = vmatmul.mubr.f32.gmra.mrb[14].mxu0 %v27_v17  ;;  %466 = vmatpush3.bf16.msra.mxu1 %v465_v22 }
  0x41   :  { %468 = vmatprep.subr.bf16.mxu1 %v467_v25 }
  0x44   :  { %470 = vmatpush3.bf16.msra.mxu1 %v469_v28 }
  0x45   :  { %472 = vmatprep.subr.bf16.mxu1 %v471_v31 }
  0x48   :  { %474 = vmatpush3.bf16.msra.mxu1 %v473_v34 }
  0x49   :  { %476 = vmatprep.subr.bf16.mxu1 %v475_v37 }
  0x4c   :  { %478 = vmatpush3.bf16.msra.mxu1 %v477_v40 }
  0xf7   :  { %v138_v48 = vpop.f32.mrb[0].mxu0 }
  0xf8   :  { %v139_v49 = vadd.f32 %v138_v48, %v65_v46  ;;  %v140_v50 = vpop.f32.mrb[1].mxu0 }
  0xf9   :  { %v141_v51 = vadd.f32 %v140_v50, %v770_v47 }
  0xfb   :  { %480 = vtanh.f32 %v141_v51  ;;  %v144_v52 = vpop.f32.mrb[2].mxu0 }
  0xfc   :  { %482 = vtanh.f32 %v139_v49  ;;  %v145_v53 = vadd.f32 %v144_v52, %v65_v46  ;;  %v146_v54 = vpop.f32.mrb[3].mxu0 }
  0xfd   :  { %v147_v55 = vadd.f32 %v146_v54, %v770_v47 }
  0xff   :  { %484 = vtanh.f32 %v147_v55  ;;  %v150_v56 = vpop.f32.mrb[4].mxu0 }
 0x100   :  { %486 = vtanh.f32 %v145_v53  ;;  %v151_v57 = vadd.f32 %v150_v56, %v65_v46  ;;  %v152_v58 = vpop.f32.mrb[5].mxu0 }
 0x101   :  { %v153_v59 = vadd.f32 %v152_v58, %v770_v47 }
 0x103   :  { %488 = vtanh.f32 %v153_v59  ;;  %v156_v60 = vpop.f32.mrb[6].mxu0 }
 0x104   :  { %490 = vtanh.f32 %v151_v57  ;;  %v157_v61 = vadd.f32 %v156_v60, %v65_v46  ;;  %v158_v62 = vpop.f32.mrb[7].mxu0 }
 0x105   :  { %v481_v63 = vpop.eup %480  ;;  %v159_v0 = vadd.f32 %v158_v62, %v770_v47 }
 0x106   :  { %v483_v1 = vpop.eup %482  ;;  %304 = vmatprep.mubr.f32.mxu1 %v481_v63 }
 0x107   :  { %492 = vtanh.f32 %v159_v0  ;;  %v162_v2 = vpop.f32.mrb[8].mxu0  ;;  %305 = vmatmul.mubr.f32.vlgmr.msra.gmra.mrb[0].mxu1 %v483_v1 }
 0x108   :  { %494 = vtanh.f32 %v157_v61  ;;  %v163_v4 = vadd.f32 %v162_v2, %v65_v46  ;;  %v164_v5 = vpop.f32.mrb[9].mxu0 }
 0x109   :  { %v485_v6 = vpop.eup %484  ;;  %v165_v7 = vadd.f32 %v164_v5, %v770_v47 }
 0x10a   :  { %v487_v8 = vpop.eup %486  ;;  %309 = vmatprep.mubr.f32.mxu1 %v485_v6 }
 0x10b   :  { %496 = vtanh.f32 %v165_v7  ;;  %v168_v9 = vpop.f32.mrb[10].mxu0  ;;  %310 = vmatmul.mubr.f32.gmra.mrb[2].mxu1 %v487_v8 }
 0x10c   :  { %498 = vtanh.f32 %v163_v4  ;;  %v169_v10 = vadd.f32 %v168_v9, %v65_v46  ;;  %v170_v11 = vpop.f32.mrb[11].mxu0 }
 0x10d   :  { %v489_v12 = vpop.eup %488  ;;  %v171_v13 = vadd.f32 %v170_v11, %v770_v47 }
 0x10e   :  { %v491_v14 = vpop.eup %490  ;;  %314 = vmatprep.mubr.f32.mxu1 %v489_v12 }
 0x10f   :  { %500 = vtanh.f32 %v171_v13  ;;  %v174_v15 = vpop.f32.mrb[12].mxu0  ;;  %315 = vmatmul.mubr.f32.gmra.mrb[4].mxu1 %v491_v14 }
 0x110   :  { %502 = vtanh.f32 %v169_v10  ;;  %v175_v16 = vadd.f32 %v174_v15, %v65_v46  ;;  %v176_v17 = vpop.f32.mrb[13].mxu0 }
 0x111   :  { %v493_v18 = vpop.eup %492  ;;  %v177_v19 = vadd.f32 %v176_v17, %v770_v47 }
 0x112   :  { %v495_v20 = vpop.eup %494  ;;  %319 = vmatprep.mubr.f32.mxu1 %v493_v18 }
 0x113   :  { %504 = vtanh.f32 %v177_v19  ;;  %v180_v21 = vpop.f32.mrb[14].mxu0  ;;  %320 = vmatmul.mubr.f32.gmra.mrb[6].mxu1 %v495_v20 }
 0x114   :  { %506 = vtanh.f32 %v175_v16  ;;  %v181_v3 = vadd.f32 %v180_v21, %v65_v46  ;;  %v182_v22 = vpop.f32.mrb[15].mxu0 }
 0x115   :  { %v497_v23 = vpop.eup %496  ;;  %v183_v24 = vadd.f32 %v182_v22, %v770_v47 }
 0x116   :  { %v499_v25 = vpop.eup %498  ;;  %324 = vmatprep.mubr.f32.mxu1 %v497_v23 }
 0x117   :  { %508 = vtanh.f32 %v183_v24  ;;  %325 = vmatmul.mubr.f32.gmra.mrb[8].mxu1 %v499_v25 }
 0x118   :  { %510 = vtanh.f32 %v181_v3 }
 0x119   :  { %v501_v26 = vpop.eup %500 }
 0x11a   :  { %v503_v27 = vpop.eup %502  ;;  %329 = vmatprep.mubr.f32.mxu1 %v501_v26 }
 0x11b   :  { %330 = vmatmul.mubr.f32.gmra.mrb[10].mxu1 %v503_v27 }
 0x11d   :  { %v505_v28 = vpop.eup %504 }
 0x11e   :  { %v507_v29 = vpop.eup %506  ;;  %334 = vmatprep.mubr.f32.mxu1 %v505_v28 }
 0x11f   :  { %335 = vmatmul.mubr.f32.gmra.mrb[12].mxu1 %v507_v29 }
 0x121   :  { %v509_v30 = vpop.eup %508 }
 0x122   :  { %v511_v31 = vpop.eup %510  ;;  %339 = vmatprep.mubr.f32.mxu1 %v509_v30 }
 0x123   :  { %340 = vmatmul.mubr.f32.gmra.mrb[14].mxu1 %v511_v31 }
 0x1da   :  { %v391_v32 = vpop.f32.mrb[0].mxu1 }
 0x1db   :  { %v392_v34 = vpop.f32.mrb[1].mxu1 }
 0x1dc   :  { %v393_v35 = vadd.f32 %v392_v34, %v391_v32 }
 0x1de   :  { %v307_v36 = vadd.f32 %v393_v35, %v358_v33  ;;  %v394_v37 = vpop.f32.mrb[2].mxu1 }
 0x1df   :  { %v395_v38 = vpop.f32.mrb[3].mxu1 }
 0x1e0   :  { %346 = vst.msk [vmem:[%s820_s5] sm:$0xff] %vm345_vm0, %v307_v36  ;;  %v396_v39 = vadd.f32 %v395_v38, %v394_v37 }
 0x1e2   :  { %v312_v40 = vadd.f32 %v396_v39, %v358_v33  ;;  %v397_v41 = vpop.f32.mrb[4].mxu1 }
 0x1e3   :  { %v398_v42 = vpop.f32.mrb[5].mxu1 }
 0x1e4   :  { %347 = vst.msk [vmem:[%s820_s5 + $0x8] sm:$0xff] %vm345_vm0, %v312_v40  ;;  %v399_v43 = vadd.f32 %v398_v42, %v397_v41 }
 0x1e6   :  { %v317_v44 = vadd.f32 %v399_v43, %v358_v33  ;;  %v400_v45 = vpop.f32.mrb[6].mxu1 }
 0x1e7   :  { %v401_v46 = vpop.f32.mrb[7].mxu1 }
 0x1e8   :  { %348 = vst.msk [vmem:[%s820_s5 + $0x10] sm:$0xff] %vm345_vm0, %v317_v44  ;;  %v402_v47 = vadd.f32 %v401_v46, %v400_v45 }
 0x1ea   :  { %v322_v48 = vadd.f32 %v402_v47, %v358_v33  ;;  %v403_v49 = vpop.f32.mrb[8].mxu1 }
 0x1eb   :  { %v404_v50 = vpop.f32.mrb[9].mxu1 }
 0x1ec   :  { %349 = vst.msk [vmem:[%s820_s5 + $0x18] sm:$0xff] %vm345_vm0, %v322_v48  ;;  %v405_v51 = vadd.f32 %v404_v50, %v403_v49 }
 0x1ee   :  { %v327_v52 = vadd.f32 %v405_v51, %v358_v33  ;;  %v406_v53 = vpop.f32.mrb[10].mxu1 }
 0x1ef   :  { %v407_v54 = vpop.f32.mrb[11].mxu1 }
 0x1f0   :  { %350 = vst.msk [vmem:[%s820_s5 + $0x20] sm:$0xff] %vm345_vm0, %v327_v52  ;;  %v408_v55 = vadd.f32 %v407_v54, %v406_v53 }
 0x1f2   :  { %v332_v56 = vadd.f32 %v408_v55, %v358_v33  ;;  %v409_v57 = vpop.f32.mrb[12].mxu1 }
 0x1f3   :  { %v410_v58 = vpop.f32.mrb[13].mxu1 }
 0x1f4   :  { %351 = vst.msk [vmem:[%s820_s5 + $0x28] sm:$0xff] %vm345_vm0, %v332_v56  ;;  %v411_v59 = vadd.f32 %v410_v58, %v409_v57 }
 0x1f6   :  { %v337_v60 = vadd.f32 %v411_v59, %v358_v33  ;;  %v412_v61 = vpop.f32.mrb[14].mxu1 }
 0x1f7   :  { %v413_v62 = vpop.f32.mrb[15].mxu1 }
 0x1f8   :  { %352 = vst.msk [vmem:[%s820_s5 + $0x30] sm:$0xff] %vm345_vm0, %v337_v60  ;;  %v414_v63 = vadd.f32 %v413_v62, %v412_v61 }
 0x1fa   :  { %v342_v0 = vadd.f32 %v414_v63, %v358_v33 }
 0x1fc   :  { %353 = vst.msk [vmem:[%s820_s5 + $0x38] sm:$0xff] %vm345_vm0, %v342_v0 }

</bundles_post_ra>
